<compile_context>
chip_gen: v5e
topology: v5e:2x2
jax: 0.10.0
libtpu: 0.0.40
codegen_flags: <defaults>
</compile_context>

<pallas_src>
import jax
import jax.numpy as jnp
from jax.experimental import pallas as pl
from jax.experimental.pallas import tpu as pltpu


def _round_up(x, m):
    return ((x + m - 1) // m) * m


# ---------------------------------------------------------------------------
# Pallas kernel: fused (class|bbox|landmark) 1x1 conv on one NCHW hw-tile
# ---------------------------------------------------------------------------
def _fused_heads_kernel(level_of_tile_ref, x_ref, w_ref, b_ref, o_ref):
    # level_of_tile_ref: (num_tiles,) int32 in SMEM — consumed only by the
    #                    index_maps (selects the per-level fused weight/bias).
    # x_ref: (1, C_in, T)     feature-map tile (NCHW layout, HW flattened)
    # w_ref: (1, C_out, C_in) fused [class | bbox | landmark] conv1x1 weight
    # b_ref: (1, C_out, 1)    fused bias (f32)
    # o_ref: (1, C_out, T)    fused logits tile (lane-dense, T % 128 == 0)
    del level_of_tile_ref
    acc = jnp.dot(w_ref[0], x_ref[0], preferred_element_type=jnp.float32)
    o_ref[0] = (acc + b_ref[0]).astype(o_ref.dtype)


def retinaface_heads_pallas(features, class_params, bbox_params, lmk_params,
                            num_anchors=2, max_hw_tile=512,
                            compute_dtype=jnp.bfloat16):
    """Fused RetinaFace head stage — one pallas_call for all levels/batches.

    features:       list of L SSH feature maps, each (N, C_in, H, W)
    class_params:   list of (weight (2A, C_in),  bias (2A,))  per level
    bbox_params:    list of (weight (4A, C_in),  bias (4A,))  per level
    lmk_params:     list of (weight (10A, C_in), bias (10A,)) per level
    Returns (scores (N, M, 2), bboxes (N, M, 4), landmarks (N, M, 10)),
    M = sum_level(H*W*A), matching PyTorch RetinaFace.forward ordering.
    """
    num_levels = len(features)
    N, C_in = int(features[0].shape[0]), int(features[0].shape[1])
    A = num_anchors
    C_out = 16 * A
    level_hw = [int(f.shape[2] * f.shape[3]) for f in features]

    # Lane-dense hw tile (multiple of 128), capped at the largest level.
    tile = min(max(128, (max_hw_tile // 128) * 128),
               _round_up(max(level_hw), 128))

    # Explicit zero padding per level (no unspecified tail columns), then one
    # concatenation along the flattened HW axis.  Pure views/pads on NCHW —
    # the wide feature maps are never transposed.
    xs, tile_levels, padded_hw = [], [], []
    for lvl, f in enumerate(features):
        hw = level_hw[lvl]
        hwp = _round_up(hw, tile)
        x = f.reshape(N, C_in, hw)
        if hwp != hw:
            x = jnp.pad(x, ((0, 0), (0, 0), (0, hwp - hw)))
        xs.append(x)
        padded_hw.append(hwp)
        tile_levels.extend([lvl] * (hwp // tile))
    x_all = jnp.concatenate(xs, axis=-1).astype(compute_dtype)
    hwp_total = sum(padded_hw)
    num_tiles = hwp_total // tile

    # Stacked fused weights/biases: one slab per level, picked per tile.
    w_stack = jnp.stack([
        jnp.concatenate(
            [class_params[l][0], bbox_params[l][0], lmk_params[l][0]], axis=0)
        for l in range(num_levels)]).astype(compute_dtype)        # (L, 16A, C_in)
    b_stack = jnp.stack([
        jnp.concatenate(
            [class_params[l][1], bbox_params[l][1], lmk_params[l][1]], axis=0)
        for l in range(num_levels)]
    ).reshape(num_levels, C_out, 1).astype(jnp.float32)           # (L, 16A, 1)

    tile_level = jnp.asarray(tile_levels, dtype=jnp.int32)        # (num_tiles,)

    cost = pl.CostEstimate(
        flops=2 * N * C_out * C_in * hwp_total,
        transcendentals=0,
        bytes_accessed=(x_all.size * x_all.dtype.itemsize
                        + w_stack.size * w_stack.dtype.itemsize
                        + b_stack.size * 4
                        + N * C_out * hwp_total * 4))

    fused = pl.pallas_call(
        _fused_heads_kernel,
        out_shape=jax.ShapeDtypeStruct((N, C_out, hwp_total), jnp.float32),
        grid_spec=pltpu.PrefetchScalarGridSpec(
            num_scalar_prefetch=1,
            grid=(N, num_tiles),
            in_specs=[
                # activations: lane-dense hw tile of the concatenated map
                pl.BlockSpec((1, C_in, tile), lambda n, t, lvl: (n, 0, t)),
                # per-level fused weight slab, chosen by the prefetched table
                pl.BlockSpec((1, C_out, C_in), lambda n, t, lvl: (lvl[t], 0, 0)),
                # per-level fused bias
                pl.BlockSpec((1, C_out, 1), lambda n, t, lvl: (lvl[t], 0, 0)),
            ],
            out_specs=pl.BlockSpec((1, C_out, tile), lambda n, t, lvl: (n, 0, t)),
        ),
        compiler_params=pltpu.CompilerParams(
            dimension_semantics=("parallel", "parallel")),
        cost_estimate=cost,
    )(tile_level, x_all, w_stack, b_stack)

    # Hoisted glue: ONE transpose of the narrow fused output, then per-level
    # slices (padding dropped) + free reshapes, and one concat per head.
    fused_t = jnp.transpose(fused, (0, 2, 1))                     # (N, HWp_total, 16A)
    scores, bboxes, landmarks = [], [], []
    off = 0
    for lvl in range(num_levels):
        hw = level_hw[lvl]
        rows = fused_t[:, off:off + hw, :]                        # (N, hw, 16A)
        scores.append(rows[..., :2 * A].reshape(N, hw * A, 2))
        bboxes.append(rows[..., 2 * A:6 * A].reshape(N, hw * A, 4))
        landmarks.append(rows[..., 6 * A:].reshape(N, hw * A, 10))
        off += padded_hw[lvl]
    return (jnp.concatenate(scores, axis=1),
            jnp.concatenate(bboxes, axis=1),
            jnp.concatenate(landmarks, axis=1))


# ---------------------------------------------------------------------------
# Pure-JAX reference replicating the PyTorch head forward exactly (f32)
# ---------------------------------------------------------------------------
def retinaface_heads_reference(features, class_params, bbox_params, lmk_params):
    def head(x, w, b, k):
        out = jnp.einsum("nchw,oc->nohw", x, w,
                         preferred_element_type=jnp.float32) + b[None, :, None, None]
        out = jnp.transpose(out, (0, 2, 3, 1))            # permute(0,2,3,1)
        return out.reshape(out.shape[0], -1, k)           # view(N, -1, k)

    scores = jnp.concatenate(
        [head(x, *class_params[i], 2) for i, x in enumerate(features)], axis=1)
    bboxes = jnp.concatenate(
        [head(x, *bbox_params[i], 4) for i, x in enumerate(features)], axis=1)
    landmarks = jnp.concatenate(
        [head(x, *lmk_params[i], 10) for i, x in enumerate(features)], axis=1)
    return scores, bboxes, landmarks


if __name__ == "__main__":
    key = jax.random.PRNGKey(0)
    keys = iter(jax.random.split(key, 32))

    # Small shapes consistent with the module: mobilenetv1 config has
    # out_dim=64 and the RetinaFace heads use num_anchors=2.  FPN levels at
    # strides 8/16/32 of a 160x160 image -> 20x20, 10x10, 5x5.
    N, C_in, A = 2, 64, 2
    level_hw = [(20, 20), (10, 10), (5, 5)]

    features, class_params, bbox_params, lmk_params = [], [], [], []
    for (H, W) in level_hw:
        features.append(
            jax.random.normal(next(keys), (N, C_in, H, W), dtype=jnp.float32))
        class_params.append(
            (jax.random.normal(next(keys), (2 * A, C_in), jnp.float32) * 0.05,
             jax.random.normal(next(keys), (2 * A,), jnp.float32) * 0.05))
        bbox_params.append(
            (jax.random.normal(next(keys), (4 * A, C_in), jnp.float32) * 0.05,
             jax.random.normal(next(keys), (4 * A,), jnp.float32) * 0.05))
        lmk_params.append(
            (jax.random.normal(next(keys), (10 * A, C_in), jnp.float32) * 0.05,
             jax.random.normal(next(keys), (10 * A,), jnp.float32) * 0.05))

    ref_scores, ref_bboxes, ref_landmarks = retinaface_heads_reference(
        features, class_params, bbox_params, lmk_params)
    refs = (ref_scores, ref_bboxes, ref_landmarks)
    total = sum(h * w for h, w in level_hw) * A

    # f32 compute path: bit-for-bit semantics check against the reference.
    outs32 = jax.block_until_ready(retinaface_heads_pallas(
        features, class_params, bbox_params, lmk_params,
        num_anchors=A, compute_dtype=jnp.float32))
    for out, ref, k in zip(outs32, refs, (2, 4, 10)):
        assert out.shape == (N, total, k), out.shape
        assert jnp.allclose(out, ref, atol=1e-3, rtol=1e-3), "f32 mismatch"

    # bf16 compute path (production config: halves HBM traffic on the
    # bandwidth-bound head stage); f32 accumulation + f32 bias/output.
    outs16 = jax.block_until_ready(retinaface_heads_pallas(
        features, class_params, bbox_params, lmk_params,
        num_anchors=A, compute_dtype=jnp.bfloat16))
    for out, ref, k in zip(outs16, refs, (2, 4, 10)):
        assert out.shape == (N, total, k), out.shape
        assert jnp.allclose(out, ref, atol=3e-2, rtol=3e-2), "bf16 mismatch"

    print("KERNEL_OK")
</pallas_src>

<mosaic_0001>
module attributes {stable_mosaic.version = 11 : i64} {
  func.func @_fused_heads_kernel(%arg0: i32, %arg1: i32, %arg2: memref<3xi32, #tpu.memory_space<smem>>, %arg3: memref<1x64x512xf32, #tpu.memory_space<vmem>>, %arg4: memref<1x32x64xf32, #tpu.memory_space<vmem>>, %arg5: memref<1x32x1xf32, #tpu.memory_space<vmem>>, %arg6: memref<1x32x512xf32, #tpu.memory_space<vmem>>) attributes {dimension_semantics = [#tpu.dimension_semantics<parallel>, #tpu.dimension_semantics<parallel>], iteration_bounds = array<i64: 2, 3>, scalar_prefetch = 1 : i64, scratch_operands = 0 : i64, tpu.core_type = #tpu.core_type<tc>, window_params = [{transform_indices = @transform_0, window_bounds = array<i64: 1, 64, 512>}, {transform_indices = @transform_1, window_bounds = array<i64: 1, 32, 64>}, {transform_indices = @transform_2, window_bounds = array<i64: 1, 32, 1>}, {transform_indices = @transform_3, window_bounds = array<i64: 1, 32, 512>}]} {
    %c0 = arith.constant 0 : index
    %c0_0 = arith.constant 0 : index
    %c0_1 = arith.constant 0 : index
    %0 = vector.load %arg4[%c0, %c0_0, %c0_1] : memref<1x32x64xf32, #tpu.memory_space<vmem>>, vector<1x32x64xf32>
    %1 = vector.shape_cast %0 : vector<1x32x64xf32> to vector<32x64xf32>
    %c0_2 = arith.constant 0 : index
    %c0_3 = arith.constant 0 : index
    %c0_4 = arith.constant 0 : index
    %2 = vector.load %arg3[%c0_2, %c0_3, %c0_4] : memref<1x64x512xf32, #tpu.memory_space<vmem>>, vector<1x64x512xf32>
    %3 = vector.shape_cast %2 : vector<1x64x512xf32> to vector<64x512xf32>
    %cst = arith.constant dense<0.000000e+00> : vector<32x512xf32>
    %4 = tpu.matmul %1, %3, %cst {dimension_numbers = #tpu.dot_dimension_numbers<[1], [0], [0], [1], [0, 0, 1, 1], [], []>} : vector<32x64xf32>, vector<64x512xf32>, vector<32x512xf32> -> vector<32x512xf32>
    %c0_5 = arith.constant 0 : index
    %c0_6 = arith.constant 0 : index
    %c0_7 = arith.constant 0 : index
    %5 = vector.load %arg5[%c0_5, %c0_6, %c0_7] : memref<1x32x1xf32, #tpu.memory_space<vmem>>, vector<1x32x1xf32>
    %6 = vector.shape_cast %5 : vector<1x32x1xf32> to vector<32x1xf32>
    %7 = vector.broadcast %6 : vector<32x1xf32> to vector<32x512xf32>
    %8 = arith.addf %4, %7 : vector<32x512xf32>
    %c0_8 = arith.constant 0 : index
    %c0_9 = arith.constant 0 : index
    %c0_10 = arith.constant 0 : index
    %9 = vector.load %arg6[%c0_8, %c0_9, %c0_10] : memref<1x32x512xf32, #tpu.memory_space<vmem>>, vector<1x32x512xf32>
    %10 = vector.shape_cast %9 : vector<1x32x512xf32> to vector<32x512xf32>
    %11 = vector.shape_cast %8 : vector<32x512xf32> to vector<1x32x512xf32>
    tpu.vector_store %arg6[%c0_8, %c0_9, %c0_10], %11 {strides = array<i32>} : memref<1x32x512xf32, #tpu.memory_space<vmem>>, vector<1x32x512xf32>,
    return
  }
  func.func @transform_0(%arg0: i32, %arg1: i32, %arg2: memref<3xi32, #tpu.memory_space<smem>>) -> (i32, i32, i32) {
    %c0_i32 = arith.constant 0 : i32
    %c0_i32_0 = arith.constant 0 : i32
    return %arg0, %c0_i32, %arg1 : i32, i32, i32
  }
  func.func @transform_1(%arg0: i32, %arg1: i32, %arg2: memref<3xi32, #tpu.memory_space<smem>>) -> (i32, i32, i32) {
    %0 = arith.index_cast %arg1 : i32 to index
    %1 = memref.load %arg2[%0] : memref<3xi32, #tpu.memory_space<smem>>
    %c0_i32 = arith.constant 0 : i32
    %c0_i32_0 = arith.constant 0 : i32
    %c0_i32_1 = arith.constant 0 : i32
    return %1, %c0_i32, %c0_i32_0 : i32, i32, i32
  }
  func.func @transform_2(%arg0: i32, %arg1: i32, %arg2: memref<3xi32, #tpu.memory_space<smem>>) -> (i32, i32, i32) {
    %0 = arith.index_cast %arg1 : i32 to index
    %1 = memref.load %arg2[%0] : memref<3xi32, #tpu.memory_space<smem>>
    %c0_i32 = arith.constant 0 : i32
    %c0_i32_0 = arith.constant 0 : i32
    %c0_i32_1 = arith.constant 0 : i32
    return %1, %c0_i32, %c0_i32_0 : i32, i32, i32
  }
  func.func @transform_3(%arg0: i32, %arg1: i32, %arg2: memref<3xi32, #tpu.memory_space<smem>>) -> (i32, i32, i32) {
    %c0_i32 = arith.constant 0 : i32
    %c0_i32_0 = arith.constant 0 : i32
    return %arg0, %c0_i32, %arg1 : i32, i32, i32
  }
}

</mosaic_0001>

<bundles_post_ra>
// kernel: tpu_custom_call.1
= control target key start
LH: loop header
LB: loop body
LE: loop exit
PB: predicated region body
PF: predicated region fallthrough
CT: control target
= control target key end

     0   :  { %s882_s18 = smov [#allocation3]   ;;  %s1157_s0 = inlined_call_operand.vmem [shape: s32[3], index: 0, kind: input, shape index: {}]   ;;  %s1158_s1 = inlined_call_operand.hbm [shape: f32[2,64,1536], index: 1, kind: input, shape index: {}]   ;;  %s1159_s2 = inlined_call_operand.vmem [shape: f32[3,32,64], index: 2, kind: input, shape index: {}]   ;;  %s1160_s3 = inlined_call_operand.vmem [shape: f32[3,32,1], index: 3, kind: input, shape index: {}]   ;;  %s1161_s4 = inlined_call_operand.hbm [shape: f32[2,32,1536], index: 4, kind: output, shape index: {}]  }
   0x1   :  { %s10_s17 = sshll.u32 %s1157_s0, 4  ;;  %s11_s17 = int_to_ptr.vmem [resolvable:$true] %s10_s17 }
   0x2   :  { %13 = dma.vmem_to_smem %s11_s17, 16, %s882_s18, [#allocation2] }
   0x3   :  { %840 = dma.done.wait [#allocation2], 16 }
   0x4   :  { %841 = vsyncadd [#allocation2], 4294967280 }
   0x5   :  { %16 = sfence }
   0x6   :  { %17 = vsyncpa [#allocation5], 0 }
   0x7   :  { %19 = vsyncpa [#allocation5 + $0x1], 0 }
   0x8   :  { %20 = vsyncpa [#allocation6], 0 }
   0x9   :  { %22 = vsyncpa [#allocation6 + $0x1], 0  ;;  %s918_s19 = smov 0   ;;  %s920_s20 = smov 0  }
   0xa   :  { %s922_s21 = smov 0   ;;  %s924_s22 = smov 0  }
   0xb   :  { %s926_s23 = smov 0   ;;  %s928_s0 = smov 0  }
   0xc   :  { %s930_s24 = smov 0   ;;  %s932_s25 = smov 0  }
   0xd LB: > { %1165 = sst [smem:[#allocation11_spill]] %s872_s0  ;;  %s611_s26 = sadd.s32 4294967295, %s880_s25   ;;  %s880_s25 = sphi %s932_s25, %s28_s25   ;;  %s876_s24 = sphi %s930_s24, %s1181_s24   ;;  %s872_s0 = sphi %s928_s0, %s1175_s0   ;;  %s868_s23 = sphi %s926_s23, %s1180_s23   ;;  %s864_s22 = sphi %s924_s22, %s1174_s22   ;;  %s860_s21 = sphi %s922_s21, %s1179_s21   ;;  %s856_s20 = sphi %s920_s20, %s1178_s20   ;;  %s852_s19 = sphi %s918_s19, %s1177_s19  }
   0xe   : > { %s612_s27 = sadd.s32 4294967294, %s880_s25   ;;  %s37_s28 = sadd.s32 1, %s872_s0 }
   0xf   : > { %s40_s29 = sadd.s32 1, %s876_s24  ;;  %p38_p0 = scmp.ge.s32.totalorder %s37_s28, 3 }
  0x10   : > { %s49_s30 = sadd.s32 1, %s860_s21  ;;  %p56_p1 = scmp.ne.s32.totalorder %s860_s21, %s856_s20 }
  0x11   : > { %p57_p2 = scmp.eq.s32.totalorder %s880_s25, 0  ;;  %s1183_s28 = smov (%p38_p0, %s37_s28), 0 }
  0x12   : > { %1166 = sst [smem:[#allocation12_spill]] %s1183_s28  ;;  %s1185_s29 = smov (!%p38_p0, %s40_s29), %s876_s24 }
  0x13   : > { %s45_s5 = ssub.s32 %s872_s0, %s1183_s28  ;;  %p971_p3 = por %p57_p2, %p56_p1 }
  0x14   : > { %p42_p4 = scmp.ge.s32.totalorder %s1185_s29, 2  ;;  %p62_p5 = scmp.ne.s32.totalorder %s856_s20, %s852_s19 }
  0x15   : > { %p63_p6 = scmp.eq.s32.totalorder %s611_s26, 0  ;;  %p144_p7 = scmp.eq.s32.totalorder %s611_s26, 5 }
  0x16   : > { %s1187_s29 = smov (%p42_p4, %s1185_s29), 0  ;;  %p150_p10 = scmp.eq.s32.totalorder %s612_s27, 5 }
  0x17   : > { %1168 = sst [smem:[#allocation13_spill]] %s1187_s29  ;;  %p979_p8 = por %p63_p6, %p62_p5 }
  0x18   : > { %p983_p9 = por %p144_p7, %p56_p1  ;;  %s44_s9 = ssub.s32 %s876_s24, %s1187_s29 }
  0x19   : > { %s46_s10 = sor.u32 %s45_s5, %s44_s9  ;;  %p989_p12 = por %p150_p10, %p62_p5 }
  0x1a   : > { %p47_p11 = scmp.eq.s32.totalorder %s46_s10, 0  ;;  %p662_p13 = scmp.lt.s32.totalorder %s880_s25, 6 }
  0x1b   : > { %s170_s12 = sand.u32 1, %s860_s21   ;;  %s616_s15 = sshll.u32 %s872_s0, 2 }
  0x1c   : > { %s996_s13 = scalar_select %p47_p11, %s860_s21, %s49_s30  }
  0x1d   : > { %s615_s14 = sshll.u32 %s170_s12, 8  ;;  %s648_s16 = smul.u32 96, %s876_s24 }
  0x1e   : > { %1172 = sst [smem:[#allocation14_spill]] %s996_s13  ;;  %s174_s17 = scalar_lea.vmem [#allocation4], %s615_s14 }
  0x1f   : > { %s184_s18 = sshll.u32 %s174_s17, 4  ;;  %p655_p0 = pnand %p662_p13, %p971_p3  ;;  %s185_s18 = int_to_ptr.vmem [resolvable:$true] %s184_s18 }
  0x20   : > { %s179_s26 = sadd.s32 %s648_s16, %s616_s15  ;;  %p618_p1 = scmp.ge.s32.totalorder %s880_s25, 1 }
  0x21   : > { %s617_s27 = sshll.u32 %s179_s26, 3  ;;  %s171_s30 = scalar_lea.sflag [#allocation5], %s170_s12 }
  0x22   : > { %s181_s10 = scalar_lea.hbm %s1158_s1, %s617_s27  ;;  %s883_s28 = smov 1536  }
  0x23   : > { %s182_s29 = sshll.u32 %s181_s10, 4  ;;  %s884_s13 = smov 512   ;;  %s183_s29 = int_to_ptr.hbm [resolvable:$true] %s182_s29 }
  0x24   : > { %s885_s0 = smov 32   ;;  %p212_p2 = scmp.lt.s32.totalorder %s880_s25, 7 }
  0x25   : > { %657 = dma.hbm_to_vmem [thread:$0]  (!%p655_p0), %s183_s29, 4096, %s185_s18, %s171_s30, %s883_s28, %s884_s13, %s885_s0  }
  0x26   : > { %p213_p4 = pnand %p618_p1, %p212_p2 }
  0x27   : > { %s1008_s6 = sand.u32 (!%p213_p4), 1, %s856_s20  }
  0x28   : > { %216 = sbr.rel (%p213_p4) target bundleno = 229 (0xe5), region = 32  ;;  %s619_s14 = sshll.u32 (!%p213_p4), %s1008_s6, 8 }
  0x29   : > { %s219_s15 = scalar_lea.sflag (!%p213_p4), [#allocation5], %s1008_s6  ;;  %s1012_s16 = scalar_lea.vmem (!%p213_p4), [#allocation4], %s619_s14 }
  0x2d   : > { %843 = dma.done.wait (%p979_p8), %s219_s15, 4096  }
  0x2e   : > { %845 = vsyncadd (%p979_p8), %s219_s15, 4294963200  ;;  %s259_s0 = sld [smem:[#allocation3 + %s864_s22]]  ;;  %v886_v0 = vmov 0   ;;  %v306_v1 = vld [vmem:[%s1012_s16 + $0xe0] sm:$0xff]  ;;  %v307_v2 = vld [vmem:[%s1012_s16 + $0xe8] sm:$0xff]  ;;  %vm334_vm0 = vcmask 523264  }
  0x2f   : > { %736 = vset.pattern.permute.xlu0 %v886_v0  ;;  %s1020_s28 = sld [smem:[#allocation3 + %s864_s22]]  ;;  %737 = vset.pattern.permute.xlu1 %v886_v0  ;;  %v308_v3 = vld [vmem:[%s1012_s16 + $0xf0] sm:$0xff]  ;;  %v309_v4 = vld [vmem:[%s1012_s16 + $0xf8] sm:$0xff]  ;;  %v302_v5 = vld [vmem:[%s1012_s16 + $0xc0] sm:$0xff]  ;;  %s620_s5 = sshll.u32 %s1008_s6, 7 }
  0x30   : > { %355 = vmatpush.msra.mxu0 %v306_v1  ;;  %384 = vmatpush.msra.mxu1 %v307_v2  ;;  %v303_v6 = vld [vmem:[%s1012_s16 + $0xc8] sm:$0xff]  ;;  %v304_v7 = vld [vmem:[%s1012_s16 + $0xd0] sm:$0xff]  ;;  %v305_v8 = vld [vmem:[%s1012_s16 + $0xd8] sm:$0xff]  ;;  %s1094_s9 = scalar_lea.vmem [#allocation7], %s620_s5  ;;  %s649_s10 = smul.u32 48, %s868_s23 }
  0x31   : > { %413 = vmatpush.msra.mxu2 %v308_v3  ;;  %442 = vmatpush.msra.mxu3 %v309_v4  ;;  %v298_v9 = vld [vmem:[%s1012_s16 + $0xa0] sm:$0xff]  ;;  %v299_v10 = vld [vmem:[%s1012_s16 + $0xa8] sm:$0xff]  ;;  %v300_v11 = vld [vmem:[%s1012_s16 + $0xb0] sm:$0xff]  ;;  %s642_s30 = sshll.u32 %s864_s22, 2  ;;  %s800_s18 = scalar_lea.hbm %s1161_s4, 768 }
  0x32   : > { %356 = vmatpush.msra.mxu0 %v302_v5  ;;  %385 = vmatpush.msra.mxu1 %v303_v6  ;;  %v301_v12 = vld [vmem:[%s1012_s16 + $0xb8] sm:$0xff]  ;;  %v294_v13 = vld [vmem:[%s1012_s16 + $0x80] sm:$0xff]  ;;  %v295_v14 = vld [vmem:[%s1012_s16 + $0x88] sm:$0xff]  ;;  %s491_s14 = sadd.s32 %s649_s10, %s642_s30 }
  0x33   : > { %414 = vmatpush.msra.mxu2 %v304_v7  ;;  %443 = vmatpush.msra.mxu3 %v305_v8  ;;  %v296_v15 = vld [vmem:[%s1012_s16 + $0x90] sm:$0xff]  ;;  %v297_v16 = vld [vmem:[%s1012_s16 + $0x98] sm:$0xff]  ;;  %v290_v17 = vld [vmem:[%s1012_s16 + $0x60] sm:$0xff]  ;;  %s643_s15 = sshll.u32 %s491_s14, 3 }
  0x34   : > { %p260_p3 = scmp.lt.s32.totalorder %s259_s0, 2  ;;  %357 = vmatpush.msra.mxu0 %v298_v9  ;;  %386 = vmatpush.msra.mxu1 %v299_v10  ;;  %v291_v18 = vld [vmem:[%s1012_s16 + $0x68] sm:$0xff]  ;;  %v292_v19 = vld [vmem:[%s1012_s16 + $0x70] sm:$0xff]  ;;  %v293_v20 = vld [vmem:[%s1012_s16 + $0x78] sm:$0xff] }
  0x35   : > { %p267_p5 = scmp.lt.s32.totalorder %s1020_s28, 2  ;;  %415 = vmatpush.msra.mxu2 %v300_v11  ;;  %444 = vmatpush.msra.mxu3 %v301_v12  ;;  %v286_v21 = vld [vmem:[%s1012_s16 + $0x40] sm:$0xff]  ;;  %v287_v22 = vld [vmem:[%s1012_s16 + $0x48] sm:$0xff]  ;;  %v288_v23 = vld [vmem:[%s1012_s16 + $0x50] sm:$0xff] }
  0x36   : > { %s1189_s0 = smov (!%p260_p3, %s259_s0), 2  ;;  %358 = vmatpush.msra.mxu0 %v294_v13  ;;  %387 = vmatpush.msra.mxu1 %v295_v14  ;;  %v289_v24 = vld [vmem:[%s1012_s16 + $0x58] sm:$0xff]  ;;  %v282_v25 = vld [vmem:[%s1012_s16 + $0x20] sm:$0xff]  ;;  %v283_v26 = vld [vmem:[%s1012_s16 + $0x28] sm:$0xff] }
  0x37   : > { %s1191_s28 = smov (!%p267_p5, %s1020_s28), 2  ;;  %416 = vmatpush.msra.mxu2 %v296_v15  ;;  %445 = vmatpush.msra.mxu3 %v297_v16  ;;  %s646_s29 = sshll.u32 %s1189_s0, 5  ;;  %v284_v27 = vld [vmem:[%s1012_s16 + $0x30] sm:$0xff]  ;;  %v285_v28 = vld [vmem:[%s1012_s16 + $0x38] sm:$0xff]  ;;  %v278_v29 = vld [vmem:[%s1012_s16] sm:$0xff] }
  0x38   : > { %359 = vmatpush.msra.mxu0 %v290_v17  ;;  %388 = vmatpush.msra.mxu1 %v291_v18  ;;  %s647_s7 = sshll.u32 %s1191_s28, 5  ;;  %s1064_s17 = scalar_lea.vmem %s1159_s2, %s646_s29  ;;  %v279_v30 = vld [vmem:[%s1012_s16 + $0x8] sm:$0xff]  ;;  %v280_v31 = vld [vmem:[%s1012_s16 + $0x10] sm:$0xff]  ;;  %v281_v32 = vld [vmem:[%s1012_s16 + $0x18] sm:$0xff] }
  0x39   : > { %417 = vmatpush.msra.mxu2 %v292_v19  ;;  %446 = vmatpush.msra.mxu3 %v293_v20  ;;  %s271_s27 = scalar_lea.vmem %s1160_s3, %s647_s7  ;;  %v274_v33 = vld [vmem:[%s1064_s17] sm:$0xff]  ;;  %v275_v36 = vld [vmem:[%s1064_s17 + $0x8] sm:$0xff]  ;;  %v276_v39 = vld [vmem:[%s1064_s17 + $0x10] sm:$0xff]  ;;  %s493_s16 = scalar_lea.hbm %s1161_s4, %s643_s15 }
  0x3a   : > { %360 = vmatpush.msra.mxu0 %v286_v21  ;;  %389 = vmatpush.msra.mxu1 %v287_v22  ;;  %v310_v34 = vld [vmem:[%s271_s27] sm:$0xff]  ;;  %v312_v35 = vld [vmem:[%s271_s27 + $0x10] sm:$0xff]  ;;  %v311_v37 = vld [vmem:[%s271_s27 + $0x8] sm:$0xff]  ;;  %s494_s0 = sshll.u32 %s1094_s9, 4  ;;  %s496_s28 = sshll.u32 %s493_s16, 4  ;;  %s495_s0 = int_to_ptr.vmem [resolvable:$true] %s494_s0  ;;  %s497_s28 = int_to_ptr.hbm [resolvable:$true] %s496_s28 }
  0x3b   : > { %418 = vmatpush.msra.mxu2 %v288_v23  ;;  %447 = vmatpush.msra.mxu3 %v289_v24  ;;  %v313_v38 = vld [vmem:[%s271_s27 + $0x18] sm:$0xff]  ;;  %s480_s29 = scalar_lea.sflag [#allocation6], %s1008_s6  ;;  %s794_s7 = sshra.s32 %s497_s28, 4  ;;  %s795_s7 = int_to_ptr.hbm [resolvable:$true] %s794_s7 }
  0x3c   : > { %361 = vmatpush.msra.mxu0 %v282_v25  ;;  %390 = vmatpush.msra.mxu1 %v283_v26  ;;  %v277_v40 = vld [vmem:[%s1064_s17 + $0x18] sm:$0xff]  ;;  %s796_s12 = scalar_lea.hbm %s795_s7, 128  ;;  %p801_p10 = scmp.lt.s32.totalorder %s795_s7, %s1161_s4 }
  0x3d   : > { %419 = vmatpush.msra.mxu2 %v284_v27  ;;  %448 = vmatpush.msra.mxu3 %v285_v28  ;;  %p797_p6 = scmp.ne.s32.totalorder %s795_s7, %s796_s12  ;;  %p802_p11 = scmp.lt.s32.totalorder %s800_s18, %s796_s12 }
  0x3e   : > { %362 = vmatpush.msra.mxu0 %v278_v29  ;;  %391 = vmatpush.msra.mxu1 %v279_v30 }
  0x3f   : > { %420 = vmatpush.msra.mxu2 %v280_v31  ;;  %449 = vmatpush.msra.mxu3 %v281_v32  ;;  %p798_p7 = pnand %p797_p6, %p983_p9  ;;  %p803_p13 = por %p802_p11, %p801_p10 }
  0x40   : > { %625 = vmatmul.msk.f32.vlgmr.msra.gmra.mxu0 %vm334_vm0, %v274_v33  ;;  %629 = vmatmul.msk.f32.vlgmr.msra.gmra.mxu1 %vm334_vm0, %v274_v33 }
  0x41   : > { %633 = vmatmul.msk.f32.vlgmr.msra.gmra.mxu2 %vm334_vm0, %v274_v33  ;;  %637 = vmatmul.msk.f32.vlgmr.msra.gmra.mxu3 %vm334_vm0, %v274_v33  ;;  %p799_p8 = pneg %p798_p7 }
  0x42   : > { %316 = vperm.xlu0 %736, %v310_v34   ;;  %326 = vperm.xlu1 %737, %v312_v35  }
  0x43   : > { %p804_p0 = pnand %p803_p13, %p799_p8 }
  0x48   : > { %626 = vmatmul.msk.f32.gmra.mxu0 %vm334_vm0, %v275_v36  ;;  %630 = vmatmul.msk.f32.gmra.mxu1 %vm334_vm0, %v275_v36 }
  0x49   : > { %634 = vmatmul.msk.f32.gmra.mxu2 %vm334_vm0, %v275_v36  ;;  %638 = vmatmul.msk.f32.gmra.mxu3 %vm334_vm0, %v275_v36 }
  0x4a   : > { %321 = vperm.xlu0 %736, %v311_v37   ;;  %331 = vperm.xlu1 %737, %v313_v38  }
  0x50   : > { %627 = vmatmul.msk.f32.gmra.mxu0 %vm334_vm0, %v276_v39  ;;  %631 = vmatmul.msk.f32.gmra.mxu1 %vm334_vm0, %v276_v39 }
  0x51   : > { %635 = vmatmul.msk.f32.gmra.mxu2 %vm334_vm0, %v276_v39  ;;  %639 = vmatmul.msk.f32.gmra.mxu3 %vm334_vm0, %v276_v39 }
  0x58   : > { %628 = vmatmul.msk.f32.gmra.mxu0 %vm334_vm0, %v277_v40  ;;  %632 = vmatmul.msk.f32.gmra.mxu1 %vm334_vm0, %v277_v40 }
  0x59   : > { %636 = vmatmul.msk.f32.gmra.mxu2 %vm334_vm0, %v277_v40  ;;  %640 = vmatmul.msk.f32.gmra.mxu3 %vm334_vm0, %v277_v40 }
  0xb4   : > { %v317_v41 = vpop.permute.xlu0 %316  ;;  %v327_v55 = vpop.permute.xlu1 %326 }
  0xbc   : > { %v322_v46 = vpop.permute.xlu0 %321  ;;  %v332_v0 = vpop.permute.xlu1 %331 }
  0xbd   : > { %v364_v42 = vpop.f32.mrf.mxu0  ;;  %v393_v43 = vpop.f32.mrf.mxu1 }
  0xbe   : > { %v365_v44 = vadd.f32 %v364_v42, %v317_v41  ;;  %v394_v45 = vadd.f32 %v393_v43, %v317_v41 }
  0xc0   : > { %463 = vst [vmem:[%s1094_s9] sm:$0xff] %v365_v44 }
  0xc1   : > { %464 = vst [vmem:[%s1094_s9 + $0x8] sm:$0xff] %v394_v45 }
  0xc4   : > { %v422_v47 = vpop.f32.mrf.mxu2  ;;  %v451_v48 = vpop.f32.mrf.mxu3 }
  0xc5   : > { %v423_v49 = vadd.f32 %v422_v47, %v317_v41  ;;  %v452_v50 = vadd.f32 %v451_v48, %v317_v41  ;;  %v367_v51 = vpop.f32.mrf.mxu0  ;;  %v396_v52 = vpop.f32.mrf.mxu1 }
  0xc6   : > { %v368_v53 = vadd.f32 %v367_v51, %v322_v46  ;;  %v397_v54 = vadd.f32 %v396_v52, %v322_v46 }
  0xc7   : > { %465 = vst [vmem:[%s1094_s9 + $0x10] sm:$0xff] %v423_v49 }
  0xc8   : > { %466 = vst [vmem:[%s1094_s9 + $0x18] sm:$0xff] %v452_v50 }
  0xc9   : > { %467 = vst [vmem:[%s1094_s9 + $0x20] sm:$0xff] %v368_v53 }
  0xca   : > { %468 = vst [vmem:[%s1094_s9 + $0x28] sm:$0xff] %v397_v54 }
  0xcc   : > { %v425_v56 = vpop.f32.mrf.mxu2  ;;  %v454_v57 = vpop.f32.mrf.mxu3 }
  0xcd   : > { %v426_v58 = vadd.f32 %v425_v56, %v322_v46  ;;  %v455_v59 = vadd.f32 %v454_v57, %v322_v46  ;;  %v370_v60 = vpop.f32.mrf.mxu0  ;;  %v399_v61 = vpop.f32.mrf.mxu1 }
  0xce   : > { %v371_v62 = vadd.f32 %v370_v60, %v327_v55  ;;  %v400_v63 = vadd.f32 %v399_v61, %v327_v55 }
  0xcf   : > { %469 = vst [vmem:[%s1094_s9 + $0x30] sm:$0xff] %v426_v58 }
  0xd0   : > { %470 = vst [vmem:[%s1094_s9 + $0x38] sm:$0xff] %v455_v59 }
  0xd1   : > { %471 = vst [vmem:[%s1094_s9 + $0x40] sm:$0xff] %v371_v62 }
  0xd2   : > { %472 = vst [vmem:[%s1094_s9 + $0x48] sm:$0xff] %v400_v63 }
  0xd4   : > { %v428_v1 = vpop.f32.mrf.mxu2  ;;  %v457_v2 = vpop.f32.mrf.mxu3 }
  0xd5   : > { %v429_v3 = vadd.f32 %v428_v1, %v327_v55  ;;  %v458_v4 = vadd.f32 %v457_v2, %v327_v55  ;;  %v373_v5 = vpop.f32.mrf.mxu0  ;;  %v402_v6 = vpop.f32.mrf.mxu1 }
  0xd6   : > { %v374_v7 = vadd.f32 %v373_v5, %v332_v0  ;;  %v403_v8 = vadd.f32 %v402_v6, %v332_v0 }
  0xd7   : > { %473 = vst [vmem:[%s1094_s9 + $0x50] sm:$0xff] %v429_v3 }
  0xd8   : > { %474 = vst [vmem:[%s1094_s9 + $0x58] sm:$0xff] %v458_v4 }
  0xd9   : > { %475 = vst [vmem:[%s1094_s9 + $0x60] sm:$0xff] %v374_v7 }
  0xda   : > { %476 = vst [vmem:[%s1094_s9 + $0x68] sm:$0xff] %v403_v8 }
  0xdc   : > { %v431_v9 = vpop.f32.mrf.mxu2  ;;  %v460_v10 = vpop.f32.mrf.mxu3 }
  0xdd   : > { %v432_v11 = vadd.f32 %v431_v9, %v332_v0  ;;  %v461_v12 = vadd.f32 %v460_v10, %v332_v0 }
  0xdf   : > { %477 = vst [vmem:[%s1094_s9 + $0x70] sm:$0xff] %v432_v11 }
  0xe0   : > { %478 = vst [vmem:[%s1094_s9 + $0x78] sm:$0xff] %v461_v12 }
  0xe1   : > { %807 = shalt.err (!%p804_p0)
}
  0xe2   : > { %s887_s6 = smov 512   ;;  %s888_s5 = smov 1536  }
  0xe3   : > { %s889_s9 = smov 32  }
  0xe4   : > { %652 = dma.vmem_to_hbm [thread:$0]  (%p983_p9), %s495_s0, 2048, %s497_s28, %s480_s29, %s887_s6, %s888_s5, %s889_s9  }
  0xe5 PF: > { %p663_p1 = scmp.ge.s32.totalorder %s880_s25, 2  ;;  %s511_s10 = sand.u32 1, %s852_s19  }
  0xe6   : > { %s512_s30 = scalar_lea.sflag [#allocation6], %s511_s10 }
  0xe7   : > { %p659_p2 = pnand %p663_p1, %p989_p12 }
  0xe9   : > { %p660_p4 = pneg %p659_p2 }
  0xeb   : > { %847 = dma.done.wait (%p660_p4), %s512_s30, 2048  }
  0xec   : > { %849 = vsyncadd (%p660_p4), %s512_s30, 4294965248  ;;  %s28_s25 = sadd.s32 1, %s880_s25   ;;  %s1173_s14 = sld [smem:[#allocation14_spill]] }
  0xed   : > { %p25_p3 = scmp.ge.s32.totalorder %s28_s25, 8   ;;  %s1174_s22 = sld [smem:[#allocation11_spill]] }
  0xee   : > { %s1175_s0 = sld [smem:[#allocation12_spill]]  ;;  %s1177_s19 = smov %s856_s20 }
  0xef   : > { %s1176_s8 = sld [smem:[#allocation13_spill]]  ;;  %s1178_s20 = smov %s860_s21 }
  0xf0   : > { %s1180_s23 = smov %s876_s24 }
  0xf1   :  { %27 = sbr.rel (!%p25_p3) target bundleno = 13 (0xd), region = 83 }
  0xf2   : > { %s1179_s21 = smov %s1173_s14 }
  0xf5   : > { %s1181_s24 = smov %s1176_s8 }
  0xf6   :  { %518 = vsyncpa [#allocation5], 1 }
  0xf7   :  { %520 = vsyncpa [#allocation5 + $0x1], 1 }
  0xf8   :  { %521 = vsyncpa [#allocation6], 1 }
  0xf9   :  { %523 = vsyncpa [#allocation6 + $0x1], 1 }

</bundles_post_ra>
